<compile_context>
chip_gen: v5e
topology: v5e:2x2
jax: 0.10.0
libtpu: 0.0.40
codegen_flags: <defaults>
</compile_context>

<pallas_src>
import functools
import math

import jax
import jax.numpy as jnp
from jax.experimental import pallas as pl
from jax.experimental.pallas import tpu as pltpu


def _qnet_attn_kernel(x_ref,
                      wemd_ref, bemd_ref,
                      wqkv_ref, bqkv_ref,
                      wo_ref, bo_ref,
                      w1_ref, b1_ref, lnw_ref, lnb_ref,
                      w2t_ref, b2_ref,
                      o_ref,
                      *, n_heads: int, d_k: int, d_model: int,
                      bpt: int, seq: int):
    bf16 = jnp.bfloat16
    rows = bpt * seq
    x = x_ref[0]                                        # (rows, F) f32

    # --- embedding: Linear(n_features, d_model) ---
    h = jnp.dot(x.astype(bf16), wemd_ref[...],
                preferred_element_type=jnp.float32) + bemd_ref[...]       # (rows, D)

    # --- fused QKV projection (1/sqrt(d_k) folded into the Q slice host-side) ---
    qkv = jnp.dot(h.astype(bf16), wqkv_ref[...],
                  preferred_element_type=jnp.float32) + bqkv_ref[...]     # (rows, 3D)
    q = qkv[:, :d_model].reshape(bpt, seq, d_model)
    k = qkv[:, d_model:2 * d_model].reshape(bpt, seq, d_model)
    v = qkv[:, 2 * d_model:].reshape(bpt, seq, d_model)

    # --- multi-head self-attention; head outputs folded straight into w_o ---
    attn_out = None
    for hd in range(n_heads):                           # static unroll
        lo = hd * d_k
        qh = q[:, :, lo:lo + d_k].astype(bf16)
        kh = k[:, :, lo:lo + d_k].astype(bf16)
        vh = v[:, :, lo:lo + d_k].astype(bf16)
        s = jnp.einsum('bqd,bkd->bqk', qh, kh,
                       preferred_element_type=jnp.float32)                # (bpt,S,S)
        s = s - jnp.max(s, axis=-1, keepdims=True)
        e = jnp.exp(s)
        p = e * pl.reciprocal(jnp.sum(e, axis=-1, keepdims=True), approx=True)
        # TODO(synk): F.dropout(p=0.1) on attention weights omitted (eval-mode
        # deterministic semantics; training-mode parity not provided).
        head = jnp.einsum('bqk,bkd->bqd', p.astype(bf16), vh,
                          preferred_element_type=jnp.float32)             # (bpt,S,dk)
        partial = jnp.dot(head.reshape(rows, d_k).astype(bf16),
                          wo_ref[lo:lo + d_k, :],
                          preferred_element_type=jnp.float32)             # (rows, D)
        attn_out = partial if attn_out is None else attn_out + partial
    attn_out = attn_out + bo_ref[...]

    # residual
    x2 = h + attn_out                                                     # (rows, D)

    # --- Linear(d_model, hiddens) -> LayerNorm -> LeakyReLU (f32 elementwise) ---
    y = jnp.dot(x2.astype(bf16), w1_ref[...],
                preferred_element_type=jnp.float32) + b1_ref[...]         # (rows, H)
    mean = jnp.mean(y, axis=-1, keepdims=True)
    var = jnp.mean((y - mean) ** 2, axis=-1, keepdims=True)
    yn = (y - mean) * jax.lax.rsqrt(var + 1e-5) * lnw_ref[...] + lnb_ref[...]
    ya = jnp.where(yn >= 0.0, yn, 0.01 * yn)            # LeakyReLU, slope 0.01

    # --- Linear(hiddens, 1), emitted as a lane-dense (1, rows) slab ---
    out_row = jax.lax.dot_general(
        w2t_ref[...], ya.astype(bf16),
        dimension_numbers=(((1,), (1,)), ((), ())),
        preferred_element_type=jnp.float32) + b2_ref[...]                 # (1, rows)
    o_ref[0] = out_row


def _const_spec(shape):
    zeros = (0,) * len(shape)
    return pl.BlockSpec(tuple(shape), lambda t, _z=zeros: _z)


def qnet_attn_forward(x, params, n_heads, *, target_rows=256):
    """x: (B, S, n_features) f32 -> (B, S) f32 q-values (eval-mode forward)."""
    B, S, F = x.shape
    d_model = params["w_emd"].shape[1]
    d_k = d_model // n_heads
    hiddens = params["w1"].shape[1]

    # Fold whole batches into the matmul M dim; aim for ~256 rows per tile
    # (v6e/v7x MXU is 256 wide; 128 rows already saturates v5e's 128-wide MXU).
    bpt = max(1, min(B, max(1, target_rows // S)))
    num_tiles = pl.cdiv(B, bpt)
    b_pad = num_tiles * bpt
    if b_pad != B:
        x = jnp.concatenate([x, jnp.zeros((b_pad - B, S, F), x.dtype)], axis=0)
    rows = bpt * S
    x_tiles = x.reshape(num_tiles, rows, F)

    # Host-side weight prep: fused QKV (scale folded into Q), bf16 MXU operands,
    # biases / LayerNorm params stay f32 (added after f32 accumulation).
    bf16 = jnp.bfloat16
    scale = 1.0 / math.sqrt(d_k)
    w_qkv = jnp.concatenate(
        [params["w_q"] * scale, params["w_k"], params["w_v"]], axis=1)
    b_qkv = jnp.concatenate(
        [params["b_q"] * scale, params["b_k"], params["b_v"]], axis=1)
    weights = [
        params["w_emd"].astype(bf16), params["b_emd"],
        w_qkv.astype(bf16), b_qkv,
        params["w_o"].astype(bf16), params["b_o"],
        params["w1"].astype(bf16), params["b1"],
        params["ln_w"], params["ln_b"],
        params["w2"].T.astype(bf16), params["b2"],
    ]

    in_specs = [pl.BlockSpec((1, rows, F), lambda t: (t, 0, 0))]
    in_specs += [_const_spec(w.shape) for w in weights]

    kernel = functools.partial(_qnet_attn_kernel, n_heads=n_heads, d_k=d_k,
                               d_model=d_model, bpt=bpt, seq=S)

    # Advisory cost estimate for the XLA scheduler around this custom call.
    total_rows = b_pad * S
    flops = int(
        2 * total_rows * (F * d_model + 4 * d_model * d_model
                          + d_model * hiddens + hiddens)
        + 4 * b_pad * n_heads * S * S * d_k)
    transcendentals = int(b_pad * n_heads * S * S + 2 * total_rows)
    bytes_accessed = int(
        x_tiles.size * x_tiles.dtype.itemsize
        + sum(int(w.size) * w.dtype.itemsize for w in weights)
        + num_tiles * rows * 4)

    out = pl.pallas_call(
        kernel,
        out_shape=jax.ShapeDtypeStruct((num_tiles, 1, rows), jnp.float32),
        grid_spec=pltpu.PrefetchScalarGridSpec(
            num_scalar_prefetch=0,
            grid=(num_tiles,),
            in_specs=in_specs,
            out_specs=pl.BlockSpec((1, 1, rows), lambda t: (t, 0, 0)),
        ),
        compiler_params=pltpu.CompilerParams(
            dimension_semantics=("parallel",)),
        cost_estimate=pl.CostEstimate(
            flops=flops, transcendentals=transcendentals,
            bytes_accessed=bytes_accessed),
    )(x_tiles, *weights)
    return out.reshape(b_pad * S)[: B * S].reshape(B, S)


def init_params(key, n_features, hiddens, n_heads):
    n_resource = n_features - 1
    d_model = n_resource * 32 * n_heads
    keys = jax.random.split(key, 16)

    def lin(kw, kb, fan_in, fan_out):
        # stored as (in, out) + (1, out), i.e. transposed from PyTorch's (out, in)
        w = jax.random.normal(kw, (fan_in, fan_out), jnp.float32) * 0.05
        b = jax.random.normal(kb, (1, fan_out), jnp.float32) * 0.05
        return w, b

    p = {}
    p["w_emd"], p["b_emd"] = lin(keys[0], keys[1], n_features, d_model)
    p["w_q"], p["b_q"] = lin(keys[2], keys[3], d_model, d_model)
    p["w_k"], p["b_k"] = lin(keys[4], keys[5], d_model, d_model)
    p["w_v"], p["b_v"] = lin(keys[6], keys[7], d_model, d_model)
    p["w_o"], p["b_o"] = lin(keys[8], keys[9], d_model, d_model)
    p["w1"], p["b1"] = lin(keys[10], keys[11], d_model, hiddens)
    p["ln_w"] = jnp.ones((1, hiddens), jnp.float32)
    p["ln_b"] = jnp.zeros((1, hiddens), jnp.float32)
    p["w2"], p["b2"] = lin(keys[12], keys[13], hiddens, 1)
    return p, d_model


def reference_forward(x, p, n_heads):
    """Pure-JAX f32 reference mirroring the PyTorch module (eval mode)."""
    d_model = p["w_emd"].shape[1]
    d_k = d_model // n_heads
    h = x @ p["w_emd"] + p["b_emd"]
    q = h @ p["w_q"] + p["b_q"]
    k = h @ p["w_k"] + p["b_k"]
    v = h @ p["w_v"] + p["b_v"]
    B, S, _ = h.shape
    qh = q.reshape(B, S, n_heads, d_k).transpose(0, 2, 1, 3)
    kh = k.reshape(B, S, n_heads, d_k).transpose(0, 2, 1, 3)
    vh = v.reshape(B, S, n_heads, d_k).transpose(0, 2, 1, 3)
    s = jnp.einsum("bhqd,bhkd->bhqk", qh, kh) / math.sqrt(d_k)
    w = jax.nn.softmax(s, axis=-1)
    a = jnp.einsum("bhqk,bhkd->bhqd", w, vh).transpose(0, 2, 1, 3).reshape(B, S, d_model)
    a = a @ p["w_o"] + p["b_o"]
    x2 = h + a
    y = x2 @ p["w1"] + p["b1"]
    mean = y.mean(-1, keepdims=True)
    var = ((y - mean) ** 2).mean(-1, keepdims=True)
    yn = (y - mean) / jnp.sqrt(var + 1e-5) * p["ln_w"] + p["ln_b"]
    ya = jnp.where(yn >= 0, yn, 0.01 * yn)
    out = ya @ p["w2"] + p["b2"]
    return out[..., 0]


if __name__ == "__main__":
    # shapes implied by the module: n_features=5 -> n_resource=4,
    # d_model = 4*32*1 = 128; hiddens=32; batch=2; seq (MKP items) = 8
    n_features = 5
    hiddens = 32
    n_heads = 1
    B, S = 2, 8

    key = jax.random.PRNGKey(0)
    kp, kx = jax.random.split(key)
    params, d_model = init_params(kp, n_features, hiddens, n_heads)
    x = jax.random.normal(kx, (B, S, n_features), jnp.float32)

    out = qnet_attn_forward(x, params, n_heads)
    out = jax.block_until_ready(out)

    ref = reference_forward(x, params, n_heads)
    assert out.shape == (B, S)
    # tolerance sized for bf16 MXU matmuls + approx reciprocal vs f32 reference
    assert jnp.allclose(out, ref, atol=5e-2, rtol=5e-2), "mismatch vs reference"

    print("KERNEL_OK")
</pallas_src>

<mosaic_0001>
module attributes {stable_mosaic.version = 11 : i64} {
  func.func @_qnet_attn_kernel(%arg0: i32, %arg1: memref<1x16x5xf32, #tpu.memory_space<vmem>>, %arg2: memref<5x128xbf16, #tpu.memory_space<vmem>>, %arg3: memref<1x128xf32, #tpu.memory_space<vmem>>, %arg4: memref<128x384xbf16, #tpu.memory_space<vmem>>, %arg5: memref<1x384xf32, #tpu.memory_space<vmem>>, %arg6: memref<128x128xbf16, #tpu.memory_space<vmem>>, %arg7: memref<1x128xf32, #tpu.memory_space<vmem>>, %arg8: memref<128x32xbf16, #tpu.memory_space<vmem>>, %arg9: memref<1x32xf32, #tpu.memory_space<vmem>>, %arg10: memref<1x32xf32, #tpu.memory_space<vmem>>, %arg11: memref<1x32xf32, #tpu.memory_space<vmem>>, %arg12: memref<1x32xbf16, #tpu.memory_space<vmem>>, %arg13: memref<1x1xf32, #tpu.memory_space<vmem>>, %arg14: memref<1x1x16xf32, #tpu.memory_space<vmem>>) attributes {dimension_semantics = [#tpu.dimension_semantics<parallel>], iteration_bounds = array<i64: 1>, scalar_prefetch = 0 : i64, scratch_operands = 0 : i64, tpu.core_type = #tpu.core_type<tc>, window_params = [{transform_indices = @transform_0, window_bounds = array<i64: 1, 16, 5>}, {pipeline_mode = #tpu.pipeline_mode<synchronous>, transform_indices = @transform_1, window_bounds = array<i64: 5, 128>}, {pipeline_mode = #tpu.pipeline_mode<synchronous>, transform_indices = @transform_2, window_bounds = array<i64: 1, 128>}, {pipeline_mode = #tpu.pipeline_mode<synchronous>, transform_indices = @transform_3, window_bounds = array<i64: 128, 384>}, {pipeline_mode = #tpu.pipeline_mode<synchronous>, transform_indices = @transform_4, window_bounds = array<i64: 1, 384>}, {pipeline_mode = #tpu.pipeline_mode<synchronous>, transform_indices = @transform_5, window_bounds = array<i64: 128, 128>}, {pipeline_mode = #tpu.pipeline_mode<synchronous>, transform_indices = @transform_6, window_bounds = array<i64: 1, 128>}, {pipeline_mode = #tpu.pipeline_mode<synchronous>, transform_indices = @transform_7, window_bounds = array<i64: 128, 32>}, {pipeline_mode = #tpu.pipeline_mode<synchronous>, transform_indices = @transform_8, window_bounds = array<i64: 1, 32>}, {pipeline_mode = #tpu.pipeline_mode<synchronous>, transform_indices = @transform_9, window_bounds = array<i64: 1, 32>}, {pipeline_mode = #tpu.pipeline_mode<synchronous>, transform_indices = @transform_10, window_bounds = array<i64: 1, 32>}, {pipeline_mode = #tpu.pipeline_mode<synchronous>, transform_indices = @transform_11, window_bounds = array<i64: 1, 32>}, {pipeline_mode = #tpu.pipeline_mode<synchronous>, transform_indices = @transform_12, window_bounds = array<i64: 1, 1>}, {transform_indices = @transform_13, window_bounds = array<i64: 1, 1, 16>}]} {
    %c0 = arith.constant 0 : index
    %c0_0 = arith.constant 0 : index
    %c0_1 = arith.constant 0 : index
    %0 = vector.load %arg1[%c0, %c0_0, %c0_1] : memref<1x16x5xf32, #tpu.memory_space<vmem>>, vector<1x16x5xf32>
    %1 = vector.shape_cast %0 : vector<1x16x5xf32> to vector<16x5xf32>
    %2 = arith.truncf %1 : vector<16x5xf32> to vector<16x5xbf16>
    %c0_2 = arith.constant 0 : index
    %c0_3 = arith.constant 0 : index
    %3 = vector.load %arg2[%c0_2, %c0_3] : memref<5x128xbf16, #tpu.memory_space<vmem>>, vector<5x128xbf16>
    %cst = arith.constant dense<0.000000e+00> : vector<16x128xf32>
    %4 = tpu.matmul %2, %3, %cst {dimension_numbers = #tpu.dot_dimension_numbers<[1], [0], [0], [1], [0, 0, 1, 1], [], []>} : vector<16x5xbf16>, vector<5x128xbf16>, vector<16x128xf32> -> vector<16x128xf32>
    %c0_4 = arith.constant 0 : index
    %c0_5 = arith.constant 0 : index
    %5 = vector.load %arg3[%c0_4, %c0_5] : memref<1x128xf32, #tpu.memory_space<vmem>>, vector<1x128xf32>
    %6 = vector.broadcast %5 : vector<1x128xf32> to vector<16x128xf32>
    %7 = arith.addf %4, %6 : vector<16x128xf32>
    %8 = arith.truncf %7 : vector<16x128xf32> to vector<16x128xbf16>
    %c0_6 = arith.constant 0 : index
    %c0_7 = arith.constant 0 : index
    %9 = vector.load %arg4[%c0_6, %c0_7] : memref<128x384xbf16, #tpu.memory_space<vmem>>, vector<128x384xbf16>
    %cst_8 = arith.constant dense<0.000000e+00> : vector<16x384xf32>
    %10 = tpu.matmul %8, %9, %cst_8 {dimension_numbers = #tpu.dot_dimension_numbers<[1], [0], [0], [1], [0, 0, 1, 1], [], []>} : vector<16x128xbf16>, vector<128x384xbf16>, vector<16x384xf32> -> vector<16x384xf32>
    %c0_9 = arith.constant 0 : index
    %c0_10 = arith.constant 0 : index
    %11 = vector.load %arg5[%c0_9, %c0_10] : memref<1x384xf32, #tpu.memory_space<vmem>>, vector<1x384xf32>
    %12 = vector.broadcast %11 : vector<1x384xf32> to vector<16x384xf32>
    %13 = arith.addf %10, %12 : vector<16x384xf32>
    %14 = vector.extract_strided_slice %13 {offsets = [0, 0], sizes = [16, 128], strides = [1, 1]} : vector<16x384xf32> to vector<16x128xf32>
    %15 = vector.shape_cast %14 : vector<16x128xf32> to vector<2x8x128xf32>
    %16 = vector.extract_strided_slice %13 {offsets = [0, 128], sizes = [16, 128], strides = [1, 1]} : vector<16x384xf32> to vector<16x128xf32>
    %17 = vector.shape_cast %16 : vector<16x128xf32> to vector<2x8x128xf32>
    %18 = vector.extract_strided_slice %13 {offsets = [0, 256], sizes = [16, 128], strides = [1, 1]} : vector<16x384xf32> to vector<16x128xf32>
    %19 = vector.shape_cast %18 : vector<16x128xf32> to vector<2x8x128xf32>
    %20 = arith.truncf %15 : vector<2x8x128xf32> to vector<2x8x128xbf16>
    %21 = arith.truncf %17 : vector<2x8x128xf32> to vector<2x8x128xbf16>
    %22 = arith.truncf %19 : vector<2x8x128xf32> to vector<2x8x128xbf16>
    "tpu.trace_start"() <{level = 10 : i32, message = "bqd,bkd->bqk"}> : () -> ()
    %cst_11 = arith.constant dense<0.000000e+00> : vector<2x8x8xf32>
    %23 = tpu.matmul %20, %21, %cst_11 {dimension_numbers = #tpu.dot_dimension_numbers<[2], [2], [1], [1], [0, 0, 0, 1, 1, 1], [0], [0]>} : vector<2x8x128xbf16>, vector<2x8x128xbf16>, vector<2x8x8xf32> -> vector<2x8x8xf32>
    "tpu.trace_stop"() : () -> ()
    %cst_12 = arith.constant dense<0xFF800000> : vector<2x8xf32>
    %24 = vector.multi_reduction <maximumf>, %23, %cst_12 [2] : vector<2x8x8xf32> to vector<2x8xf32>
    %25 = vector.shape_cast %24 : vector<2x8xf32> to vector<2x8x1xf32>
    %26 = vector.broadcast %25 : vector<2x8x1xf32> to vector<2x8x8xf32>
    %27 = arith.subf %23, %26 : vector<2x8x8xf32>
    %28 = math.exp %27 : vector<2x8x8xf32>
    %cst_13 = arith.constant dense<0.000000e+00> : vector<2x8xf32>
    %29 = vector.multi_reduction <add>, %28, %cst_13 [2] : vector<2x8x8xf32> to vector<2x8xf32>
    %30 = vector.shape_cast %29 : vector<2x8xf32> to vector<2x8x1xf32>
    %31 = tpu.reciprocal %30 {approx = true} : vector<2x8x1xf32> -> vector<2x8x1xf32>
    %32 = vector.broadcast %31 : vector<2x8x1xf32> to vector<2x8x8xf32>
    %33 = arith.mulf %28, %32 : vector<2x8x8xf32>
    %34 = arith.truncf %33 : vector<2x8x8xf32> to vector<2x8x8xbf16>
    "tpu.trace_start"() <{level = 10 : i32, message = "bqk,bkd->bqd"}> : () -> ()
    %cst_14 = arith.constant dense<0.000000e+00> : vector<2x8x128xf32>
    %35 = tpu.matmul %34, %22, %cst_14 {dimension_numbers = #tpu.dot_dimension_numbers<[2], [1], [1], [2], [0, 0, 0, 1, 1, 2], [0], [0]>} : vector<2x8x8xbf16>, vector<2x8x128xbf16>, vector<2x8x128xf32> -> vector<2x8x128xf32>
    "tpu.trace_stop"() : () -> ()
    %36 = vector.shape_cast %35 : vector<2x8x128xf32> to vector<16x128xf32>
    %37 = arith.truncf %36 : vector<16x128xf32> to vector<16x128xbf16>
    %c0_15 = arith.constant 0 : index
    %c0_16 = arith.constant 0 : index
    %38 = vector.load %arg6[%c0_15, %c0_16] : memref<128x128xbf16, #tpu.memory_space<vmem>>, vector<128x128xbf16>
    %cst_17 = arith.constant dense<0.000000e+00> : vector<16x128xf32>
    %39 = tpu.matmul %37, %38, %cst_17 {dimension_numbers = #tpu.dot_dimension_numbers<[1], [0], [0], [1], [0, 0, 1, 1], [], []>} : vector<16x128xbf16>, vector<128x128xbf16>, vector<16x128xf32> -> vector<16x128xf32>
    %c0_18 = arith.constant 0 : index
    %c0_19 = arith.constant 0 : index
    %40 = vector.load %arg7[%c0_18, %c0_19] : memref<1x128xf32, #tpu.memory_space<vmem>>, vector<1x128xf32>
    %41 = vector.broadcast %40 : vector<1x128xf32> to vector<16x128xf32>
    %42 = arith.addf %39, %41 : vector<16x128xf32>
    %43 = arith.addf %7, %42 : vector<16x128xf32>
    %44 = arith.truncf %43 : vector<16x128xf32> to vector<16x128xbf16>
    %c0_20 = arith.constant 0 : index
    %c0_21 = arith.constant 0 : index
    %45 = vector.load %arg8[%c0_20, %c0_21] : memref<128x32xbf16, #tpu.memory_space<vmem>>, vector<128x32xbf16>
    %cst_22 = arith.constant dense<0.000000e+00> : vector<16x32xf32>
    %46 = tpu.matmul %44, %45, %cst_22 {dimension_numbers = #tpu.dot_dimension_numbers<[1], [0], [0], [1], [0, 0, 1, 1], [], []>} : vector<16x128xbf16>, vector<128x32xbf16>, vector<16x32xf32> -> vector<16x32xf32>
    %c0_23 = arith.constant 0 : index
    %c0_24 = arith.constant 0 : index
    %47 = vector.load %arg9[%c0_23, %c0_24] : memref<1x32xf32, #tpu.memory_space<vmem>>, vector<1x32xf32>
    %48 = vector.broadcast %47 : vector<1x32xf32> to vector<16x32xf32>
    %49 = arith.addf %46, %48 : vector<16x32xf32>
    %cst_25 = arith.constant dense<0.000000e+00> : vector<16xf32>
    %50 = vector.multi_reduction <add>, %49, %cst_25 [1] : vector<16x32xf32> to vector<16xf32>
    %51 = vector.shape_cast %50 : vector<16xf32> to vector<16x1xf32>
    %cst_26 = arith.constant 3.200000e+01 : f32
    %52 = vector.broadcast %cst_26 : f32 to vector<16x1xf32>
    %53 = arith.divf %51, %52 : vector<16x1xf32>
    %54 = vector.broadcast %53 : vector<16x1xf32> to vector<16x32xf32>
    %55 = arith.subf %49, %54 : vector<16x32xf32>
    %56 = arith.mulf %55, %55 : vector<16x32xf32>
    %cst_27 = arith.constant dense<0.000000e+00> : vector<16xf32>
    %57 = vector.multi_reduction <add>, %56, %cst_27 [1] : vector<16x32xf32> to vector<16xf32>
    %58 = vector.shape_cast %57 : vector<16xf32> to vector<16x1xf32>
    %cst_28 = arith.constant 3.200000e+01 : f32
    %59 = vector.broadcast %cst_28 : f32 to vector<16x1xf32>
    %60 = arith.divf %58, %59 : vector<16x1xf32>
    %61 = vector.broadcast %53 : vector<16x1xf32> to vector<16x32xf32>
    %62 = arith.subf %49, %61 : vector<16x32xf32>
    %cst_29 = arith.constant 9.99999974E-6 : f32
    %63 = vector.broadcast %cst_29 : f32 to vector<16x1xf32>
    %64 = arith.addf %60, %63 : vector<16x1xf32>
    %65 = math.rsqrt %64 : vector<16x1xf32>
    %66 = vector.broadcast %65 : vector<16x1xf32> to vector<16x32xf32>
    %67 = arith.mulf %62, %66 : vector<16x32xf32>
    %c0_30 = arith.constant 0 : index
    %c0_31 = arith.constant 0 : index
    %68 = vector.load %arg10[%c0_30, %c0_31] : memref<1x32xf32, #tpu.memory_space<vmem>>, vector<1x32xf32>
    %69 = vector.broadcast %68 : vector<1x32xf32> to vector<16x32xf32>
    %70 = arith.mulf %67, %69 : vector<16x32xf32>
    %c0_32 = arith.constant 0 : index
    %c0_33 = arith.constant 0 : index
    %71 = vector.load %arg11[%c0_32, %c0_33] : memref<1x32xf32, #tpu.memory_space<vmem>>, vector<1x32xf32>
    %72 = vector.broadcast %71 : vector<1x32xf32> to vector<16x32xf32>
    %73 = arith.addf %70, %72 : vector<16x32xf32>
    %cst_34 = arith.constant 0.000000e+00 : f32
    %74 = vector.broadcast %cst_34 : f32 to vector<16x32xf32>
    %75 = arith.cmpf oge, %73, %74 : vector<16x32xf32>
    %cst_35 = arith.constant 0.00999999977 : f32
    %76 = vector.broadcast %cst_35 : f32 to vector<16x32xf32>
    %77 = arith.mulf %76, %73 : vector<16x32xf32>
    %78 = arith.select %75, %73, %77 : vector<16x32xi1>, vector<16x32xf32>
    %c0_36 = arith.constant 0 : index
    %c0_37 = arith.constant 0 : index
    %79 = vector.load %arg12[%c0_36, %c0_37] : memref<1x32xbf16, #tpu.memory_space<vmem>>, vector<1x32xbf16>
    %80 = arith.truncf %78 : vector<16x32xf32> to vector<16x32xbf16>
    %cst_38 = arith.constant dense<0.000000e+00> : vector<1x16xf32>
    %81 = tpu.matmul %79, %80, %cst_38 {dimension_numbers = #tpu.dot_dimension_numbers<[1], [1], [0], [0], [0, 0, 1, 0], [], []>} : vector<1x32xbf16>, vector<16x32xbf16>, vector<1x16xf32> -> vector<1x16xf32>
    %c0_39 = arith.constant 0 : index
    %c0_40 = arith.constant 0 : index
    %82 = vector.load %arg13[%c0_39, %c0_40] : memref<1x1xf32, #tpu.memory_space<vmem>>, vector<1x1xf32>
    %83 = vector.broadcast %82 : vector<1x1xf32> to vector<1x16xf32>
    %84 = arith.addf %81, %83 : vector<1x16xf32>
    %c0_41 = arith.constant 0 : index
    %c0_42 = arith.constant 0 : index
    %c0_43 = arith.constant 0 : index
    %85 = vector.load %arg14[%c0_41, %c0_42, %c0_43] : memref<1x1x16xf32, #tpu.memory_space<vmem>>, vector<1x1x16xf32>
    %86 = vector.shape_cast %85 : vector<1x1x16xf32> to vector<1x16xf32>
    %87 = vector.shape_cast %84 : vector<1x16xf32> to vector<1x1x16xf32>
    tpu.vector_store %arg14[%c0_41, %c0_42, %c0_43], %87 {strides = array<i32>} : memref<1x1x16xf32, #tpu.memory_space<vmem>>, vector<1x1x16xf32>,
    return
  }
  func.func @transform_0(%arg0: i32) -> (i32, i32, i32) {
    %c0_i32 = arith.constant 0 : i32
    %c0_i32_0 = arith.constant 0 : i32
    %c0_i32_1 = arith.constant 0 : i32
    return %arg0, %c0_i32, %c0_i32_0 : i32, i32, i32
  }
  func.func @transform_1(%arg0: i32) -> (i32, i32) {
    %c0_i32 = arith.constant 0 : i32
    %c0_i32_0 = arith.constant 0 : i32
    %c0_i32_1 = arith.constant 0 : i32
    return %c0_i32, %c0_i32_0 : i32, i32
  }
  func.func @transform_2(%arg0: i32) -> (i32, i32) {
    %c0_i32 = arith.constant 0 : i32
    %c0_i32_0 = arith.constant 0 : i32
    %c0_i32_1 = arith.constant 0 : i32
    return %c0_i32, %c0_i32_0 : i32, i32
  }
  func.func @transform_3(%arg0: i32) -> (i32, i32) {
    %c0_i32 = arith.constant 0 : i32
    %c0_i32_0 = arith.constant 0 : i32
    %c0_i32_1 = arith.constant 0 : i32
    return %c0_i32, %c0_i32_0 : i32, i32
  }
  func.func @transform_4(%arg0: i32) -> (i32, i32) {
    %c0_i32 = arith.constant 0 : i32
    %c0_i32_0 = arith.constant 0 : i32
    %c0_i32_1 = arith.constant 0 : i32
    return %c0_i32, %c0_i32_0 : i32, i32
  }
  func.func @transform_5(%arg0: i32) -> (i32, i32) {
    %c0_i32 = arith.constant 0 : i32
    %c0_i32_0 = arith.constant 0 : i32
    %c0_i32_1 = arith.constant 0 : i32
    return %c0_i32, %c0_i32_0 : i32, i32
  }
  func.func @transform_6(%arg0: i32) -> (i32, i32) {
    %c0_i32 = arith.constant 0 : i32
    %c0_i32_0 = arith.constant 0 : i32
    %c0_i32_1 = arith.constant 0 : i32
    return %c0_i32, %c0_i32_0 : i32, i32
  }
  func.func @transform_7(%arg0: i32) -> (i32, i32) {
    %c0_i32 = arith.constant 0 : i32
    %c0_i32_0 = arith.constant 0 : i32
    %c0_i32_1 = arith.constant 0 : i32
    return %c0_i32, %c0_i32_0 : i32, i32
  }
  func.func @transform_8(%arg0: i32) -> (i32, i32) {
    %c0_i32 = arith.constant 0 : i32
    %c0_i32_0 = arith.constant 0 : i32
    %c0_i32_1 = arith.constant 0 : i32
    return %c0_i32, %c0_i32_0 : i32, i32
  }
  func.func @transform_9(%arg0: i32) -> (i32, i32) {
    %c0_i32 = arith.constant 0 : i32
    %c0_i32_0 = arith.constant 0 : i32
    %c0_i32_1 = arith.constant 0 : i32
    return %c0_i32, %c0_i32_0 : i32, i32
  }
  func.func @transform_10(%arg0: i32) -> (i32, i32) {
    %c0_i32 = arith.constant 0 : i32
    %c0_i32_0 = arith.constant 0 : i32
    %c0_i32_1 = arith.constant 0 : i32
    return %c0_i32, %c0_i32_0 : i32, i32
  }
  func.func @transform_11(%arg0: i32) -> (i32, i32) {
    %c0_i32 = arith.constant 0 : i32
    %c0_i32_0 = arith.constant 0 : i32
    %c0_i32_1 = arith.constant 0 : i32
    return %c0_i32, %c0_i32_0 : i32, i32
  }
  func.func @transform_12(%arg0: i32) -> (i32, i32) {
    %c0_i32 = arith.constant 0 : i32
    %c0_i32_0 = arith.constant 0 : i32
    %c0_i32_1 = arith.constant 0 : i32
    return %c0_i32, %c0_i32_0 : i32, i32
  }
  func.func @transform_13(%arg0: i32) -> (i32, i32, i32) {
    %c0_i32 = arith.constant 0 : i32
    %c0_i32_0 = arith.constant 0 : i32
    %c0_i32_1 = arith.constant 0 : i32
    return %arg0, %c0_i32, %c0_i32_0 : i32, i32, i32
  }
}

</mosaic_0001>

<bundles_post_ra>
// kernel: tpu_custom_call.1
= control target key start
LH: loop header
LB: loop body
LE: loop exit
PB: predicated region body
PF: predicated region fallthrough
CT: control target
= control target key end

     0   :  { %s1158_s0 = inlined_call_operand.vmem [shape: f32[1,16,5], index: 0, kind: input, shape index: {}]   ;;  %s1159_s1 = inlined_call_operand.vmem [shape: bf16[5,128], index: 1, kind: input, shape index: {}]   ;;  %s1160_s2 = inlined_call_operand.vmem [shape: f32[1,128], index: 2, kind: input, shape index: {}]   ;;  %s1161_s3 = inlined_call_operand.hbm [shape: bf16[128,384], index: 3, kind: input, shape index: {}]   ;;  %s1162_s4 = inlined_call_operand.vmem [shape: f32[1,384], index: 4, kind: input, shape index: {}]   ;;  %s1163_s5 = inlined_call_operand.vmem [shape: bf16[128,128], index: 5, kind: input, shape index: {}]   ;;  %s1164_s6 = inlined_call_operand.vmem [shape: f32[1,128], index: 6, kind: input, shape index: {}]   ;;  %s1165_s7 = inlined_call_operand.vmem [shape: bf16[128,32], index: 7, kind: input, shape index: {}]   ;;  %s1166_s8 = inlined_call_operand.vmem [shape: f32[1,32], index: 8, kind: input, shape index: {}]   ;;  %s1167_s9 = inlined_call_operand.vmem [shape: f32[1,32], index: 9, kind: input, shape index: {}]   ;;  %s1168_s10 = inlined_call_operand.vmem [shape: f32[1,32], index: 10, kind: input, shape index: {}]   ;;  %s1169_s11 = inlined_call_operand.vmem [shape: bf16[1,32], index: 11, kind: input, shape index: {}]   ;;  %s1170_s12 = inlined_call_operand.<no memory space> [shape: f32[1,1], index: 12, kind: input, shape index: {}]   ;;  %s1171_s13 = inlined_call_operand.hbm [shape: f32[1,1,16], index: 13, kind: output, shape index: {}]  }
   0x1   :  { %v18_v0 = vstv %s1170_s12 }
   0x2   :  { %19 = vst [vmem:[#allocation2] sm:$0x1] %v18_v0 }
   0x3   :  { %20 = vsyncpa [#allocation4], 0 }
   0x4   :  { %21 = vsyncpa [#allocation5], 0  ;;  %s32_s29 = sshll.u32 %s1161_s3, 4  ;;  %s973_s30 = smov [#allocation3]   ;;  %s33_s29 = int_to_ptr.hbm [resolvable:$true] %s32_s29 }
   0x5   :  { %s34_s14 = sshll.u32 %s973_s30, 4  ;;  %s974_s15 = smov 192   ;;  %s35_s14 = int_to_ptr.vmem [resolvable:$true] %s34_s14 }
   0x6   :  { %s975_s16 = smov 12  }
   0x7   :  { %40 = dma.hbm_to_vmem [thread:$0]  %s33_s29, 3072, %s35_s14, [#allocation4], %s974_s15, %s974_s15, %s975_s16  }
   0x8   :  { %969 = dma.done.wait [#allocation4], 3072  }
   0x9   :  { %970 = vsyncadd [#allocation4], 4294964224  ;;  %vm76_vm0 = vcmask 1041408   ;;  %vm77_vm1 = vcmask 1042432   ;;  %v976_v1 = vmov 65535   ;;  %v64_v5 = vld [vmem:[%s1158_s0] sm:$0xff] }
   0xa   :  { %v78_v2 = vsel %vm76_vm0, 4294967295, %v976_v1  ;;  %v67_v4 = vld [vmem:[%s1159_s1] sm:$0x7]  ;;  %v65_v6 = vld [vmem:[%s1158_s0 + $0x8] sm:$0xff]  ;;  %vm72_vm2 = vcmask 39936   ;;  %vm368_vm3 = vcmask 1043456  }
   0xb   :  { %v79_v3 = vsel %vm77_vm1, %v78_v2, 0  ;;  %v776_v8 = vld [vmem:[#allocation3 + $0xa8] sm:$0xf]  ;;  %v875_v9 = vld [vmem:[#allocation3 + $0xb0] sm:$0xf0]  ;;  %v66_v11 = vpack.c.bf16 %v65_v6, %v64_v5  ;;  %vm340_vm4 = vcmask 64512  }
   0xc   :  { %v81_v7 = vand.u32 %v79_v3, %v67_v4  ;;  %v874_v10 = vld [vmem:[#allocation3 + $0xac] sm:$0xf]  ;;  %v777_v12 = vor.u32 %v875_v9, %v776_v8  ;;  %v778_v13 = vld [vmem:[#allocation3 + $0xb4] sm:$0xf0]  ;;  %v784_v14 = vld [vmem:[#allocation3 + $0xb0] sm:$0xf] }
   0xd   :  { %v876_v15 = vld [vmem:[#allocation3 + $0xb8] sm:$0xf0]  ;;  %v781_v16 = vor.u32 %v874_v10, %v778_v13  ;;  %v764_v18 = vld [vmem:[#allocation3 + $0x90] sm:$0xf]  ;;  %v871_v20 = vld [vmem:[#allocation3 + $0x94] sm:$0xf] }
   0xe   :  { %90 = vmatpush.bf16.msra.mxu2 %v81_v7  ;;  %v785_v17 = vor.u32 %v876_v15, %v784_v14  ;;  %v872_v19 = vld [vmem:[#allocation3 + $0x98] sm:$0xf0]  ;;  %266 = vmatpush.bf16.msra.mxu1 %v777_v12  ;;  %v766_v22 = vld [vmem:[#allocation3 + $0x9c] sm:$0xf0]  ;;  %v772_v23 = vld [vmem:[#allocation3 + $0x98] sm:$0xf] }
   0xf   :  { %v765_v21 = vor.u32 %v872_v19, %v764_v18  ;;  %v873_v24 = vld [vmem:[#allocation3 + $0xa0] sm:$0xf0]  ;;  %v769_v25 = vor.u32 %v871_v20, %v766_v22  ;;  %v752_v27 = vld [vmem:[#allocation3 + $0x78] sm:$0xf]  ;;  %v868_v29 = vld [vmem:[#allocation3 + $0x7c] sm:$0xf] }
  0x10   :  { %294 = vmatpush.bf16.msra.mxu3 %v785_v17  ;;  %v773_v26 = vor.u32 %v873_v24, %v772_v23  ;;  %v869_v28 = vld [vmem:[#allocation3 + $0x80] sm:$0xf0]  ;;  %v754_v30 = vld [vmem:[#allocation3 + $0x84] sm:$0xf0]  ;;  %v760_v31 = vld [vmem:[#allocation3 + $0x80] sm:$0xf] }
  0x11   :  { %689 = vmatmul.msk.bf16.vlgmr.msra.gmra.mxu2 %vm72_vm2, %v66_v11  ;;  %v870_v32 = vld [vmem:[#allocation3 + $0x88] sm:$0xf0]  ;;  %v753_v33 = vor.u32 %v869_v28, %v752_v27  ;;  %v757_v34 = vor.u32 %v868_v29, %v754_v30  ;;  %v740_v36 = vld [vmem:[#allocation3 + $0x60] sm:$0xf]  ;;  %v865_v38 = vld [vmem:[#allocation3 + $0x64] sm:$0xf] }
  0x12   :  { %280 = vmatpush.bf16.msrb.mxu2 %v781_v16  ;;  %267 = vmatpush.bf16.msra.mxu1 %v765_v21  ;;  %v761_v35 = vor.u32 %v870_v32, %v760_v31  ;;  %v866_v37 = vld [vmem:[#allocation3 + $0x68] sm:$0xf0]  ;;  %v742_v39 = vld [vmem:[#allocation3 + $0x6c] sm:$0xf0]  ;;  %v748_v40 = vld [vmem:[#allocation3 + $0x68] sm:$0xf] }
  0x13   :  { %v867_v41 = vld [vmem:[#allocation3 + $0x70] sm:$0xf0]  ;;  %v741_v42 = vor.u32 %v866_v37, %v740_v36  ;;  %v745_v43 = vor.u32 %v865_v38, %v742_v39  ;;  %v728_v45 = vld [vmem:[#allocation3 + $0x48] sm:$0xf]  ;;  %v862_v47 = vld [vmem:[#allocation3 + $0x4c] sm:$0xf] }
  0x14   :  { %295 = vmatpush.bf16.msra.mxu3 %v773_v26  ;;  %v749_v44 = vor.u32 %v867_v41, %v748_v40  ;;  %v863_v46 = vld [vmem:[#allocation3 + $0x50] sm:$0xf0]  ;;  %v730_v48 = vld [vmem:[#allocation3 + $0x54] sm:$0xf0]  ;;  %v736_v49 = vld [vmem:[#allocation3 + $0x50] sm:$0xf] }
  0x15   :  { %v864_v50 = vld [vmem:[#allocation3 + $0x58] sm:$0xf0]  ;;  %v729_v51 = vor.u32 %v863_v46, %v728_v45  ;;  %v733_v52 = vor.u32 %v862_v47, %v730_v48  ;;  %v716_v54 = vld [vmem:[#allocation3 + $0x30] sm:$0xf]  ;;  %v859_v56 = vld [vmem:[#allocation3 + $0x34] sm:$0xf] }
  0x16   :  { %281 = vmatpush.bf16.msrb.mxu2 %v769_v25  ;;  %268 = vmatpush.bf16.msra.mxu1 %v753_v33  ;;  %v737_v53 = vor.u32 %v864_v50, %v736_v49  ;;  %v860_v55 = vld [vmem:[#allocation3 + $0x38] sm:$0xf0]  ;;  %v718_v58 = vld [vmem:[#allocation3 + $0x3c] sm:$0xf0]  ;;  %v724_v59 = vld [vmem:[#allocation3 + $0x38] sm:$0xf] }
  0x17   :  { %v717_v57 = vor.u32 %v860_v55, %v716_v54  ;;  %v861_v60 = vld [vmem:[#allocation3 + $0x40] sm:$0xf0]  ;;  %v721_v61 = vor.u32 %v859_v56, %v718_v58  ;;  %v704_v63 = vld [vmem:[#allocation3 + $0x18] sm:$0xf]  ;;  %v856_v1 = vld [vmem:[#allocation3 + $0x1c] sm:$0xf] }
  0x18   :  { %296 = vmatpush.bf16.msra.mxu3 %v761_v35  ;;  %v725_v62 = vor.u32 %v861_v60, %v724_v59  ;;  %v857_v0 = vld [vmem:[#allocation3 + $0x20] sm:$0xf0]  ;;  %v706_v3 = vld [vmem:[#allocation3 + $0x24] sm:$0xf0]  ;;  %v712_v4 = vld [vmem:[#allocation3 + $0x20] sm:$0xf] }
  0x19   :  { %v705_v2 = vor.u32 %v857_v0, %v704_v63  ;;  %v858_v5 = vld [vmem:[#allocation3 + $0x28] sm:$0xf0]  ;;  %v709_v6 = vor.u32 %v856_v1, %v706_v3  ;;  %v692_v8 = vld [vmem:[#allocation3] sm:$0xf]  ;;  %v853_v10 = vld [vmem:[#allocation3 + $0x4] sm:$0xf] }
  0x1a   :  { %282 = vmatpush.bf16.msrb.mxu2 %v757_v34  ;;  %269 = vmatpush.bf16.msra.mxu1 %v741_v42  ;;  %v713_v7 = vor.u32 %v858_v5, %v712_v4  ;;  %v854_v9 = vld [vmem:[#allocation3 + $0x8] sm:$0xf0]  ;;  %v694_v12 = vld [vmem:[#allocation3 + $0xc] sm:$0xf0]  ;;  %v700_v13 = vld [vmem:[#allocation3 + $0x8] sm:$0xf] }
  0x1b   :  { %v693_v11 = vor.u32 %v854_v9, %v692_v8  ;;  %v855_v14 = vld [vmem:[#allocation3 + $0x10] sm:$0xf0]  ;;  %v697_v15 = vor.u32 %v853_v10, %v694_v12  ;;  %v902_v18 = vld [vmem:[%s1160_s2] ss:$0 sm:$0xff]  ;;  %v882_v1 = vld [vmem:[%s1163_s5 + $0x28] sm:$0xff]  ;;  %vm572_vm5 = vcmask 261120  }
  0x1c   :  { %297 = vmatpush.bf16.msra.mxu3 %v749_v44  ;;  %v701_v16 = vor.u32 %v855_v14, %v700_v13  ;;  %v130_v23 = vld [vmem:[%s1162_s4] sm:$0x7]  ;;  %v884_v63 = vld [vmem:[%s1163_s5 + $0x38] sm:$0xff]  ;;  %v883_v0 = vld [vmem:[%s1163_s5 + $0x30] sm:$0xff]  ;;  %s979_s12 = smov [#allocation6]   ;;  %s679_s19 = sshll.u32 %s1171_s13, 4  ;;  %s680_s19 = int_to_ptr.hbm [resolvable:$true] %s679_s19 }
  0x1d   :  { %v133_v24 = vperm.slane %v130_v23, 1  ;;  %v134_v25 = vperm.slane %v130_v23, 2  ;;  %v132_v29 = vperm.slane %v130_v23, 0  ;;  %v880_v4 = vld [vmem:[%s1163_s5 + $0x18] sm:$0xff]  ;;  %v879_v5 = vld [vmem:[%s1163_s5 + $0x10] sm:$0xff]  ;;  %v878_v10 = vld [vmem:[%s1163_s5 + $0x8] sm:$0xff] }
  0x1e   :  { %283 = vmatpush.bf16.msrb.mxu2 %v745_v43  ;;  %270 = vmatpush.bf16.msra.mxu1 %v729_v51  ;;  %v877_v14 = vld [vmem:[%s1163_s5] sm:$0xff]  ;;  %s677_s17 = sshll.u32 %s979_s12, 4  ;;  %vm670_vm15 = vcmask 122880   ;;  %s678_s17 = int_to_ptr.vmem [resolvable:$true] %s677_s17 }
  0x20   :  { %298 = vmatpush.bf16.msra.mxu3 %v737_v53 }
  0x22   :  { %284 = vmatpush.bf16.msrb.mxu2 %v733_v52  ;;  %271 = vmatpush.bf16.msra.mxu1 %v717_v57 }
  0x24   :  { %299 = vmatpush.bf16.msra.mxu3 %v725_v62 }
  0x26   :  { %285 = vmatpush.bf16.msrb.mxu2 %v721_v61  ;;  %272 = vmatpush.bf16.msra.mxu1 %v705_v2  ;;  %v881_v2 = vld [vmem:[%s1163_s5 + $0x20] sm:$0xff] }
  0x28   :  { %300 = vmatpush.bf16.msra.mxu3 %v713_v7 }
  0x2a   :  { %286 = vmatpush.bf16.msrb.mxu2 %v709_v6  ;;  %273 = vmatpush.bf16.msra.mxu1 %v693_v11 }
  0x2c   :  { %301 = vmatpush.bf16.msra.mxu3 %v701_v16  ;;  %v891_v16 = vld [vmem:[%s1165_s7 + $0x30] sm:$0xff] }
  0x2e   :  { %287 = vmatpush.bf16.msrb.mxu2 %v697_v15  ;;  %v892_v15 = vld [vmem:[%s1165_s7 + $0x38] sm:$0xff] }
  0x30   :  { %473 = vmatpush.bf16.msrb.mxu3 %v884_v63 }
  0x34   :  { %474 = vmatpush.bf16.msrb.mxu3 %v883_v0 }
  0x38   :  { %475 = vmatpush.bf16.msrb.mxu3 %v882_v1 }
  0x3c   :  { %476 = vmatpush.bf16.msrb.mxu3 %v881_v2 }
  0x40   :  { %477 = vmatpush.bf16.msrb.mxu3 %v880_v4 }
  0x44   :  { %478 = vmatpush.bf16.msrb.mxu3 %v879_v5 }
  0x48   :  { %479 = vmatpush.bf16.msrb.mxu3 %v878_v10 }
  0x4c   :  { %480 = vmatpush.bf16.msrb.mxu3 %v877_v14  ;;  %v905_v14 = vld [vmem:[%s1167_s9] ss:$0 sm:$0xff] }
  0x94   :  { %v92_v17 = vpop.f32.mrf.mxu2 }
  0x95   :  { %v1069_v20 = vadd.f32 %v902_v18, %v92_v17  ;;  %v890_v17 = vld [vmem:[%s1165_s7 + $0x28] sm:$0xff] }
  0x9c   :  { %v94_v19 = vpop.f32.mrf.mxu2 }
  0x9d   :  { %v1071_v21 = vadd.f32 %v902_v18, %v94_v19  ;;  %v889_v18 = vld [vmem:[%s1165_s7 + $0x20] sm:$0xff] }
  0x9f   :  { %v97_v22 = vpack.c.bf16 %v1071_v21, %v1069_v20 }
  0xa1   :  { %274 = vmatmul.bf16.vlgmr.msra.gmra.mxu1 %v97_v22  ;;  %288 = vmatmul.bf16.vlgmr.msrb.gmra.mxu2 %v97_v22 }
  0xa2   :  { %302 = vmatmul.bf16.vlgmr.msra.gmra.mxu3 %v97_v22 }
 0x11e   :  { %v275_v31 = vpop.f32.mrf.mxu1 }
 0x11f   :  { %v276_v34 = vadd.f32 %v275_v31, %v132_v29  ;;  %v903_v31 = vld [vmem:[%s1164_s6] ss:$0 sm:$0xff] }
 0x121   :  { %v308_v39 = vpack.c.bf16 %v276_v34, %v276_v34 }
 0x124   :  { %v289_v26 = vpop.f32.mrf.mxu2 }
 0x125   :  { %v303_v27 = vpop.f32.mrf.mxu3  ;;  %v290_v28 = vadd.f32 %v289_v26, %v133_v24  ;;  %v888_v26 = vld [vmem:[%s1165_s7 + $0x18] sm:$0xff] }
 0x126   :  { %v304_v30 = vadd.f32 %v303_v27, %v134_v25  ;;  %v277_v44 = vpop.f32.mrf.mxu1  ;;  %v887_v27 = vld [vmem:[%s1165_s7 + $0x10] sm:$0xff] }
 0x127   :  { %v310_v32 = vpack.c.bf16 %v290_v28, %v290_v28  ;;  %v278_v45 = vadd.f32 %v277_v44, %v132_v29  ;;  %v886_v28 = vld [vmem:[%s1165_s7 + $0x8] sm:$0xff]  ;;  %v885_v29 = vld [vmem:[%s1165_s7] sm:$0xff] }
 0x128   :  { %v312_v33 = vpack.c.bf16 %v304_v30, %v304_v30 }
 0x129   :  { %321 = vmatpush.bf16.xpose.msra.mxu0 %v310_v32  ;;  %v309_v46 = vpack.c.bf16 %v278_v45, %v278_v45 }
 0x12a   :  { %v370_v35 = vsel %vm368_vm3, %v312_v33, 0 }
 0x12b   :  { %379 = vmatpush.bf16.msrb.mxu1 %v370_v35 }
 0x12c   :  { %v291_v36 = vpop.f32.mrf.mxu2 }
 0x12d   :  { %v292_v37 = vadd.f32 %v291_v36, %v133_v24  ;;  %v305_v38 = vpop.f32.mrf.mxu3 }
 0x12e   :  { %v306_v40 = vadd.f32 %v305_v38, %v134_v25  ;;  %v904_v38 = vld [vmem:[%s1166_s8] ss:$0 sm:$0xff] }
 0x12f   :  { %v311_v41 = vpack.c.bf16 %v292_v37, %v292_v37 }
 0x130   :  { %v313_v42 = vpack.c.bf16 %v306_v40, %v306_v40  ;;  %322 = vmatmul.bf16.vlgmr.msra.gmra.mxu0 %v308_v39 }
 0x131   :  { %334 = vmatpush.bf16.xpose.msrb.mxu0 %v311_v41 }
 0x132   :  { %v389_v43 = vsel %vm368_vm3, %v313_v42, 0 }
 0x133   :  { %398 = vmatpush.bf16.msra.mxu2 %v389_v43 }
 0x139   :  { %558 = vmatpush.bf16.msra.mxu0 %v892_v15 }
 0x13d   :  { %559 = vmatpush.bf16.msra.mxu0 %v891_v16 }
 0x140   :  { %335 = vmatmul.bf16.vlgmr.msrb.gmra.mxu0 %v309_v46 }
 0x141   :  { %560 = vmatpush.bf16.msra.mxu0 %v890_v17 }
 0x145   :  { %561 = vmatpush.bf16.msra.mxu0 %v889_v18 }
 0x149   :  { %562 = vmatpush.bf16.msra.mxu0 %v888_v26 }
 0x14d   :  { %563 = vmatpush.bf16.msra.mxu0 %v887_v27 }
 0x151   :  { %564 = vmatpush.bf16.msra.mxu0 %v886_v28 }
 0x155   :  { %565 = vmatpush.bf16.msra.mxu0 %v885_v29 }
 0x1ad   :  { %v323_v47 = vpop.f32.mrf.mxu0 }
 0x1ae   :  { %v341_v52 = vsel %vm340_vm4, %v323_v47, -inf }
 0x1b5   :  { %v325_v48 = vpop.f32.mrf.mxu0 }
 0x1bd   :  { %v336_v49 = vpop.f32.mrf.mxu0 }
 0x1be   :  { %v344_v50 = vsel %vm340_vm4, %v336_v49, -inf }
 0x1bf   :  { %345 = vmax.xlane.f32.xlu0 %v344_v50 }
 0x1c5   :  { %v338_v51 = vpop.f32.mrf.mxu0 }
 0x1c7   :  { %342 = vmax.xlane.f32.xlu0 %v341_v52 }
 0x232   :  { %v346_v53 = vpop.xlane.xlu0 %345 }
 0x233   :  { %v348_v54 = vsub.f32 %v336_v49, %v346_v53 }
 0x235   :  { %v351_v55 = vmul.f32 1.442695, %v348_v54 }
 0x237   :  { %907 = vpow2.f32 %v351_v55 }
 0x23a   :  { %v343_v56 = vpop.xlane.xlu0 %342 }
 0x23b   :  { %v347_v57 = vsub.f32 %v323_v47, %v343_v56 }
 0x23d   :  { %v908_v58 = vpop.eup %907  ;;  %v349_v59 = vmul.f32 1.442695, %v347_v57 }
 0x23e   :  { %v356_v60 = vsel %vm340_vm4, %v908_v58, 0.0 }
 0x23f   :  { %909 = vpow2.f32 %v349_v59  ;;  %357 = vadd.xlane.f32.xlu1 %v356_v60 }
 0x245   :  { %v910_v61 = vpop.eup %909 }
 0x246   :  { %v353_v62 = vsel %vm340_vm4, %v910_v61, 0.0 }
 0x247   :  { %354 = vadd.xlane.f32.xlu1 %v353_v62 }
 0x2b2   :  { %v358_v3 = vpop.xlane.xlu1 %357 }
 0x2b3   :  { %911 = vrcp.f32 %v358_v3 }
 0x2b9   :  { %v912_v6 = vpop.eup %911 }
 0x2ba   :  { %v362_v7 = vmul.f32 %v912_v6, %v908_v58  ;;  %v355_v8 = vpop.xlane.xlu1 %354 }
 0x2bb   :  { %913 = vrcp.f32 %v355_v8 }
 0x2bc   :  { %v364_v9 = vpack.c.bf16 %v362_v7, %v362_v7  ;;  %v644_v7 = vld [vmem:[#allocation2] sm:$0x1] }
 0x2be   :  { %787 = vmatmul.msk.bf16.vlgmr.msra.gmra.mxu2 %vm340_vm4, %v364_v9  ;;  %v978_v9 = vmov 0  }
 0x2bf   :  { %900 = vset.pattern.permute.xlu2 %v978_v9  ;;  %901 = vset.pattern.permute.xlu0 %v978_v9 }
 0x2c1   :  { %v914_v11 = vpop.eup %913 }
 0x2c2   :  { %v361_v12 = vmul.f32 %v914_v11, %v910_v61 }
 0x2c4   :  { %v363_v13 = vpack.c.bf16 %v361_v12, %v361_v12 }
 0x2c6   :  { %786 = vmatmul.msk.bf16.vlgmr.msrb.gmra.mxu1 %vm340_vm4, %v363_v13 }
 0x341   :  { %v400_v19 = vpop.f32.mrf.mxu2 }
 0x343   :  { %v381_v22 = vpop.f32.mrf.mxu1 }
 0x344   :  { %v404_v23 = vpack.c.bf16 %v400_v19, %v381_v22  ;;  %v906_v19 = vld [vmem:[%s1168_s10] ss:$0 sm:$0xff] }
 0x346   :  { %481 = vmatmul.bf16.vlgmr.msrb.gmra.mxu3 %v404_v23 }
 0x349   :  { %v402_v24 = vpop.f32.mrf.mxu2 }
 0x34b   :  { %v383_v25 = vpop.f32.mrf.mxu1 }
 0x3c9   :  { %v482_v30 = vpop.f32.mrf.mxu3 }
 0x3ca   :  { %v483_v32 = vadd.f32 %v903_v31, %v482_v30 }
 0x3cc   :  { %v487_v35 = vadd.f32 %v483_v32, %v1069_v20  ;;  %v977_v20 = vmov 32.0  }
 0x3cd   :  { %915 = vrcp.f32 %v977_v20 }
 0x3d1   :  { %v484_v33 = vpop.f32.mrf.mxu3 }
 0x3d2   :  { %v485_v34 = vadd.f32 %v903_v31, %v484_v33 }
 0x3d4   :  { %v488_v36 = vadd.f32 %v485_v34, %v1071_v21  ;;  %v916_v21 = vpop.eup %915  ;;  %v642_v34 = vld [vmem:[%s1169_s11] sm:$0x1] }
 0x3d5   :  { %v580_v45 = vmul.f32 32.0, %v916_v21  ;;  %vm584_vm6 = vweird.f32 %v916_v21 }
 0x3d6   :  { %v489_v37 = vpack.c.bf16 %v488_v36, %v487_v35 }
 0x3d7   :  { %v581_v46 = vsub.f32 1.0, %v580_v45 }
 0x3d8   :  { %566 = vmatmul.bf16.vlgmr.msra.gmra.mxu0 %v489_v37 }
 0x3d9   :  { %v582_v47 = vmul.f32 %v916_v21, %v581_v46 }
 0x3db   :  { %v583_v48 = vadd.f32 %v916_v21, %v582_v47 }
 0x3dd   :  { %v585_v49 = vsel %vm584_vm6, %v916_v21, %v583_v48 }
 0x455   :  { %v567_v39 = vpop.f32.mrf.mxu0 }
 0x456   :  { %v568_v40 = vadd.f32 %v904_v38, %v567_v39 }
 0x458   :  { %v573_v41 = vsel %vm572_vm5, %v568_v40, 0.0 }
 0x459   :  { %574 = vadd.xlane.f32.xlu2 %v573_v41 }
 0x45d   :  { %v569_v42 = vpop.f32.mrf.mxu0 }
 0x45e   :  { %v570_v43 = vadd.f32 %v904_v38, %v569_v42 }
 0x460   :  { %v576_v44 = vsel %vm572_vm5, %v570_v43, 0.0 }
 0x461   :  { %577 = vadd.xlane.f32.xlu2 %v576_v44 }
 0x479   :  { %647 = vperm.xlu2 %900, %v644_v7  }
 0x4cc   :  { %v575_v50 = vpop.xlane.xlu2 %574 }
 0x4cd   :  { %v586_v51 = vmul.f32 %v585_v49, %v575_v50 }
 0x4cf   :  { %v588_v52 = vsub.f32 %v568_v40, %v586_v51 }
 0x4d1   :  { %v590_v53 = vmul.f32 %v588_v52, %v588_v52 }
 0x4d3   :  { %v592_v54 = vsel %vm572_vm5, %v590_v53, 0.0 }
 0x4d4   :  { %593 = vadd.xlane.f32.xlu0 %v592_v54  ;;  %v578_v55 = vpop.xlane.xlu2 %577 }
 0x4d5   :  { %v587_v56 = vmul.f32 %v585_v49, %v578_v55 }
 0x4d7   :  { %v589_v57 = vsub.f32 %v570_v43, %v587_v56 }
 0x4d9   :  { %v591_v58 = vmul.f32 %v589_v57, %v589_v57 }
 0x4db   :  { %v595_v59 = vsel %vm572_vm5, %v591_v58, 0.0 }
 0x4dc   :  { %596 = vadd.xlane.f32.xlu1 %v595_v59  ;;  %v648_v35 = vpop.permute.xlu2 %647 }
 0x4dd   :  { %v650_v36 = vperm.slane %v648_v35, 0 }
 0x547   :  { %v594_v60 = vpop.xlane.xlu0 %593 }
 0x548   :  { %v598_v61 = vmul.f32 %v594_v60, %v585_v49 }
 0x54a   :  { %v600_v62 = vadd.f32 1e-05, %v598_v61 }
 0x54c   :  { %917 = vrsqrt.f32 %v600_v62  ;;  %vm608_vm8 = vweird.f32 %v600_v62 }
 0x54f   :  { %v597_v63 = vpop.xlane.xlu1 %596 }
 0x550   :  { %v599_v0 = vmul.f32 %v597_v63, %v585_v49 }
 0x552   :  { %v918_v1 = vpop.eup %917  ;;  %v601_v2 = vadd.f32 1e-05, %v599_v0 }
 0x553   :  { %v603_v3 = vmul.f32 %v918_v1, %v600_v62  ;;  %vm609_vm7 = vweird.f32 %v918_v1 }
 0x554   :  { %919 = vrsqrt.f32 %v601_v2  ;;  %vm610_vm9 = vmor %vm608_vm8, %vm609_vm7  ;;  %vm618_vm11 = vweird.f32 %v601_v2 }
 0x555   :  { %v604_v4 = vmul.f32 %v918_v1, %v603_v3 }
 0x557   :  { %v605_v5 = vmul.f32 0.5, %v604_v4 }
 0x559   :  { %v606_v6 = vsub.f32 1.5, %v605_v5 }
 0x55a   :  { %v920_v8 = vpop.eup %919 }
 0x55b   :  { %v607_v10 = vmul.f32 %v918_v1, %v606_v6  ;;  %v613_v11 = vmul.f32 %v920_v8, %v601_v2  ;;  %vm619_vm10 = vweird.f32 %v920_v8 }
 0x55c   :  { %vm620_vm12 = vmor %vm618_vm11, %vm619_vm10 }
 0x55d   :  { %v611_v12 = vsel %vm610_vm9, %v918_v1, %v607_v10  ;;  %v614_v13 = vmul.f32 %v920_v8, %v613_v11 }
 0x55e   :  { %v622_v15 = vmul.f32 %v611_v12, %v588_v52 }
 0x55f   :  { %v615_v16 = vmul.f32 0.5, %v614_v13 }
 0x560   :  { %v628_v18 = vmul.f32 %v905_v14, %v622_v15 }
 0x561   :  { %v616_v17 = vsub.f32 1.5, %v615_v16 }
 0x562   :  { %v634_v25 = vadd.f32 %v906_v19, %v628_v18 }
 0x563   :  { %v617_v22 = vmul.f32 %v920_v8, %v616_v17 }
 0x564   :  { %v638_v28 = vmul.f32 0.01, %v634_v25  ;;  %vm636_vm13 = vcmp.ge.f32.partialorder %v634_v25, 0.0 }
 0x565   :  { %v621_v23 = vsel %vm620_vm12, %v920_v8, %v617_v22 }
 0x566   :  { %v623_v24 = vmul.f32 %v621_v23, %v589_v57  ;;  %v640_v30 = vsel %vm636_vm13, %v634_v25, %v638_v28 }
 0x568   :  { %v629_v26 = vmul.f32 %v905_v14, %v623_v24 }
 0x56a   :  { %v635_v27 = vadd.f32 %v906_v19, %v629_v26 }
 0x56c   :  { %vm637_vm14 = vcmp.ge.f32.partialorder %v635_v27, 0.0  ;;  %v639_v29 = vmul.f32 0.01, %v635_v27 }
 0x56e   :  { %v641_v31 = vsel %vm637_vm14, %v635_v27, %v639_v29 }
 0x56f   :  { %v643_v32 = vpack.c.bf16 %v641_v31, %v640_v30 }
 0x571   :  { %v655_v33 = vsel %vm572_vm5, %v643_v32, 0 }
 0x572   :  { %664 = vmatpush.bf16.xpose.msra.mxu1 %v655_v33 }
 0x579   :  { %852 = vmatmul.msk.bf16.vlgmr.msra.gmra.mxu1 %vm572_vm5, %v642_v34 }
 0x5f6   :  { %v666_v37 = vpop.f32.mrf.mxu1 }
 0x5f7   :  { %v667_v38 = vadd.f32 %v666_v37, %v650_v36 }
 0x5f9   :  { %671 = vst.msk [vmem:[#allocation6] sm:$0x1] %vm670_vm15, %v667_v38 }
 0x5fa   :  { %682 = dma.vmem_to_hbm [thread:$0]  %s678_s17, 16, %s680_s19, [#allocation5]  }
 0x5fe   :  { %v668_v39 = vpop.f32.mrf.mxu1 }
 0x5ff   :  { %971 = dma.done.wait [#allocation5], 16  }
 0x600   :  { %972 = vsyncadd [#allocation5], 4294967280 }
 0x601   :  { %687 = vsyncpa [#allocation4], 1 }
 0x602   :  { %688 = vsyncpa [#allocation5], 1 }

</bundles_post_ra>
